<compile_context>
chip_gen: v7x
topology: tpu7x:2x2x1
jax: 0.10.0
libtpu: 0.0.40
codegen_flags: <defaults>
</compile_context>

<pallas_src>
from collections import namedtuple

import jax
import jax.numpy as jnp
from jax.experimental import pallas as pl
from jax.experimental.pallas import tpu as pltpu

PATCH = 4                 # feature-extractor stride / kernel size
FEAT_DIM = 32             # logical feature channels produced by the extractor
C_PAD = 128               # channels zero-padded to full lane width (exact math)
P_PAD = 128               # im2col patch dim padded to full lane width (col 48 = bias)
CLASS_KH = CLASS_KW = 3   # class feature maps are resampled to this fixed size
CLASS_K = CLASS_KH * CLASS_KW
HEAD_RAW = 13             # per-label head outputs: 1 cls + 4 loc + 8 corners
LANE = 128

FeatureMapSize = namedtuple("FeatureMapSize", ["w", "h"])


# ----------------------------------------------------------------------------
# Pallas kernel (fully fused, 2-D grid: rows x head-tiles)
# ----------------------------------------------------------------------------
def _os2d_fused_kernel(p_ref, we_ref, wc_ref, o_ref, fn_ref):
    """patches -> relu(patches @ W_embed[+bias col]) -> per-pixel L2 norm ->
    correlation+heads matmul against the N-tiled pre-folded weight.

    Normalized features for the current row tile are computed once (j == 0)
    and cached in VMEM scratch; every N tile reuses them."""
    @pl.when(pl.program_id(1) == 0)
    def _():
        # bf16 x bf16 -> f32 accumulate on the MXU; bias folded into the matmul
        feat = jnp.dot(p_ref[...], we_ref[...], preferred_element_type=jnp.float32)
        feat = jnp.maximum(feat, 0.0)                                # (tm, C_PAD) f32
        inv_norm = jax.lax.rsqrt(jnp.sum(feat * feat, axis=-1, keepdims=True) + 1e-10)
        fn_ref[...] = (feat * inv_norm).astype(fn_ref.dtype)         # bf16 cache

    # correlation with class prototypes + cls/loc/corner heads, one lane-dense
    # matmul per N tile: (tm, 128) @ (128, tn) -> (tm, tn), bf16 writeback.
    o_ref[...] = jnp.dot(fn_ref[...], wc_ref[...],
                         preferred_element_type=jnp.float32).astype(o_ref.dtype)


# ----------------------------------------------------------------------------
# Pallas wrapper
# ----------------------------------------------------------------------------
def _round_up(x, m):
    return ((x + m - 1) // m) * m


def _choose_row_tile(m):
    """Row tile: multiple of 16 (bf16 sublane packing). Small inputs run as a
    single grid step (no per-step / prologue overhead); large inputs use
    512-row tiles so the parallel row axis has several steps per core."""
    m16 = _round_up(max(m, 16), 16)
    if m16 <= 1024:
        return m16
    return 512


def _choose_n_tile(n_raw):
    """Head/label axis: labels packed contiguously (13 columns each); only the
    TOTAL width is padded to a lane multiple. Tile it so the (tm, tn) output
    block stays VMEM-bounded for any label count."""
    n128 = _round_up(max(n_raw, LANE), LANE)
    if n128 <= 2048:
        return n128, n128                  # single N tile
    tn = 1024                              # multiple of 256 (2x256 MXU), VMEM-safe
    return tn, _round_up(n_raw, tn)


def fused_os2d_apply(patches, w_embed, w_comb, tm, tn):
    """patches: (M, 128) bf16 (col 48 = 1.0 bias), w_embed: (128, 128) bf16,
    w_comb: (128, N) bf16 -> (M, N) bf16; M % tm == 0, N % tn == 0."""
    M, P = patches.shape
    C = w_embed.shape[1]
    N = w_comb.shape[1]
    grid = (M // tm, N // tn)
    flops = 2 * M * P * C + 2 * M * C * N
    bytes_accessed = (M * P * 2 + P * C * 2 + grid[0] * C * N * 2 + M * N * 2)
    return pl.pallas_call(
        _os2d_fused_kernel,
        out_shape=jax.ShapeDtypeStruct((M, N), jnp.bfloat16),
        grid_spec=pltpu.PrefetchScalarGridSpec(
            num_scalar_prefetch=0,
            grid=grid,
            in_specs=[
                pl.BlockSpec((tm, P), lambda i, j: (i, 0)),
                pl.BlockSpec((P, C), lambda i, j: (0, 0)),
                pl.BlockSpec((C, tn), lambda i, j: (0, j)),
            ],
            out_specs=pl.BlockSpec((tm, tn), lambda i, j: (i, j)),
            scratch_shapes=[pltpu.VMEM((tm, C), jnp.bfloat16)],
        ),
        compiler_params=pltpu.CompilerParams(
            dimension_semantics=("parallel", "arbitrary"),
            vmem_limit_bytes=32 * 1024 * 1024,
        ),
        cost_estimate=pl.CostEstimate(
            flops=flops, transcendentals=M, bytes_accessed=bytes_accessed),
    )(patches, w_embed, w_comb)


# ----------------------------------------------------------------------------
# Glue (reshapes / parameter setup) — plain JAX
# ----------------------------------------------------------------------------
def extract_patches(images_nchw, patch):
    """NCHW -> (B*hp*wp, patch*patch*Cin) im2col for a stride=kernel conv."""
    B, Cin, H, W = images_nchw.shape
    x = jnp.transpose(images_nchw, (0, 2, 3, 1))            # NHWC
    hp, wp = H // patch, W // patch
    x = x.reshape(B, hp, patch, wp, patch, Cin)
    x = jnp.transpose(x, (0, 1, 3, 2, 4, 5))                # B, hp, wp, ph, pw, Cin
    x = x.reshape(B * hp * wp, patch * patch * Cin)
    return x.astype(jnp.float32), (hp, wp)


def class_prototypes(class_images_list, params):
    """LabelFeatureExtractor + Os2dHeadCreator.create_os2d_head (simplified):
    per-class features (same extractor weights as the Pallas path), resampled
    to a fixed kernel size and L2-normalized. Setup-sized -> plain XLA."""
    feats = []
    for class_image in class_images_list:                   # possibly different sizes
        patches, (hp, wp) = extract_patches(class_image[None], PATCH)
        f = jnp.maximum(patches @ params["w_embed"] + params["b_embed"], 0.0)
        fm = f.reshape(hp, wp, FEAT_DIM)
        fm = jax.image.resize(fm, (CLASS_KH, CLASS_KW, FEAT_DIM), method="bilinear")
        fm = fm / jnp.sqrt(jnp.sum(fm * fm, axis=-1, keepdims=True) + 1e-10)
        feats.append(fm.reshape(CLASS_K, FEAT_DIM))
    return jnp.stack(feats, axis=0)                          # (L, K, C)


def build_head_weights(params):
    """Shared per-label head, packed: col 0 = classification (mean over kernel
    positions), 1:5 = loc regressor, 5:13 = corner regressor. No padding."""
    w = jnp.zeros((CLASS_K, HEAD_RAW), jnp.float32)
    w = w.at[:, 0].set(1.0 / CLASS_K)
    w = w.at[:, 1:5].set(params["w_loc"])
    w = w.at[:, 5:13].set(params["w_corner"])
    return w


def os2d_forward(params, images=None, class_images=None):
    """Mirrors Os2dModel.forward (eval regime): returns
    (loc_scores, class_scores, class_scores_transform_detached, fm_size, transform_corners)."""
    B = images.shape[0]
    patches, (fmH, fmW) = extract_patches(images, PATCH)      # (M, 48) f32
    M, P_raw = patches.shape

    # --- class head: prototypes + linear heads folded into one packed weight --
    class_feats = class_prototypes(class_images, params)      # (L, K, C)
    L = class_feats.shape[0]
    w_heads = build_head_weights(params)                      # (K, 13)
    # out[m, l*13 + p] = sum_c fn[m, c] * sum_k ck[l, k, c] * w_heads[k, p]
    w_comb = jnp.einsum("lkc,kp->clp", class_feats, w_heads)  # (C, L, 13)
    n_raw = L * HEAD_RAW
    w_comb = w_comb.reshape(FEAT_DIM, n_raw)
    tn, n_pad = _choose_n_tile(n_raw)
    w_comb = jnp.pad(w_comb, ((0, C_PAD - FEAT_DIM), (0, n_pad - n_raw)))
    w_comb = w_comb.astype(jnp.bfloat16)

    # --- extractor weights with the bias folded in as an extra input column ---
    w_embed_aug = jnp.zeros((P_PAD, C_PAD), jnp.float32)
    w_embed_aug = w_embed_aug.at[:P_raw, :FEAT_DIM].set(params["w_embed"])
    w_embed_aug = w_embed_aug.at[P_raw, :FEAT_DIM].set(params["b_embed"][0])
    w_embed_aug = w_embed_aug.astype(jnp.bfloat16)

    # --- lane-dense patch rows: data | 1.0 (bias) | zeros, padded to the tile --
    tm = _choose_row_tile(M)
    m_pad = _round_up(M, tm)
    patches_aug = jnp.zeros((m_pad, P_PAD), jnp.float32)
    patches_aug = patches_aug.at[:M, :P_raw].set(patches)
    patches_aug = patches_aug.at[:, P_raw].set(1.0)
    patches_aug = patches_aug.astype(jnp.bfloat16)

    # --- fused Pallas kernel --------------------------------------------------
    out = fused_os2d_apply(patches_aug, w_embed_aug, w_comb, tm, tn)  # (m_pad, n_pad) bf16
    # slice padded rows / columns off BEFORE any reshape or reduction
    out = out[:M, :n_raw].astype(jnp.float32).reshape(B, fmH * fmW, L, HEAD_RAW)

    class_scores = jnp.transpose(out[..., 0], (0, 2, 1))                # (B, L, A)
    loc_scores = jnp.transpose(out[..., 1:5], (0, 2, 3, 1))             # (B, L, 4, A)
    transform_corners = jnp.transpose(out[..., 5:13], (0, 2, 3, 1))     # (B, L, 8, A)
    class_scores_transform_detached = jax.lax.stop_gradient(class_scores)
    fm_size = FeatureMapSize(w=fmW, h=fmH)
    return (loc_scores, class_scores, class_scores_transform_detached,
            fm_size, transform_corners)


def init_params():
    key = jax.random.PRNGKey(0)
    k1, k2, k3 = jax.random.split(key, 3)
    return {
        "w_embed": 0.05 * jax.random.normal(k1, (PATCH * PATCH * 3, FEAT_DIM), jnp.float32),
        "b_embed": jnp.zeros((1, FEAT_DIM), jnp.float32),
        "w_loc": 0.1 * jax.random.normal(k2, (CLASS_K, 4), jnp.float32),
        "w_corner": 0.1 * jax.random.normal(k3, (CLASS_K, 8), jnp.float32),
    }


if __name__ == "__main__":
    params = init_params()
    key = jax.random.PRNGKey(0)
    ki, kc0, kc1 = jax.random.split(key, 3)

    # batch of 2 input images (NCHW), and 2 class images of different sizes
    images = jax.random.normal(ki, (2, 3, 32, 32), jnp.float32)
    class_images = [
        jax.random.normal(kc0, (3, 12, 12), jnp.float32),
        jax.random.normal(kc1, (3, 16, 16), jnp.float32),
    ]

    outs = os2d_forward(params, images=images, class_images=class_images)
    loc_scores, class_scores, class_scores_det, fm_size, transform_corners = outs
    jax.block_until_ready((loc_scores, class_scores, class_scores_det, transform_corners))

    B, L, A = 2, 2, fm_size.h * fm_size.w
    assert class_scores.shape == (B, L, A)
    assert class_scores_det.shape == (B, L, A)
    assert loc_scores.shape == (B, L, 4, A)
    assert transform_corners.shape == (B, L, 8, A)
    assert bool(jnp.all(jnp.isfinite(class_scores)))
    assert bool(jnp.all(jnp.isfinite(loc_scores)))
    assert bool(jnp.all(jnp.isfinite(transform_corners)))
    print("KERNEL_OK")
</pallas_src>

<mosaic_0001>
module attributes {stable_mosaic.version = 11 : i64} {
  func.func @_os2d_fused_kernel(%arg0: i32, %arg1: i32, %arg2: memref<128x128xbf16, #tpu.memory_space<vmem>>, %arg3: memref<128x128xbf16, #tpu.memory_space<vmem>>, %arg4: memref<128x128xbf16, #tpu.memory_space<vmem>>, %arg5: memref<128x128xbf16, #tpu.memory_space<vmem>>, %arg6: memref<128x128xbf16, #tpu.memory_space<vmem>>) attributes {dimension_semantics = [#tpu.dimension_semantics<parallel>, #tpu.dimension_semantics<arbitrary>], iteration_bounds = array<i64: 1, 1>, scalar_prefetch = 0 : i64, scratch_operands = 1 : i64, tpu.core_type = #tpu.core_type<tc>, window_params = [{transform_indices = @transform_0, window_bounds = array<i64: 128, 128>}, {pipeline_mode = #tpu.pipeline_mode<synchronous>, transform_indices = @transform_1, window_bounds = array<i64: 128, 128>}, {transform_indices = @transform_2, window_bounds = array<i64: 128, 128>}, {transform_indices = @transform_3, window_bounds = array<i64: 128, 128>}]} {
    %c0_i32 = arith.constant 0 : i32
    %0 = arith.cmpi eq, %arg1, %c0_i32 : i32
    %1 = arith.extui %0 : i1 to i32
    %c0_i32_0 = arith.constant 0 : i32
    %2 = arith.cmpi ne, %1, %c0_i32_0 : i32
    scf.if %2 {
      %c0_6 = arith.constant 0 : index
      %c0_7 = arith.constant 0 : index
      %8 = vector.load %arg2[%c0_6, %c0_7] : memref<128x128xbf16, #tpu.memory_space<vmem>>, vector<128x128xbf16>
      %c0_8 = arith.constant 0 : index
      %c0_9 = arith.constant 0 : index
      %9 = vector.load %arg3[%c0_8, %c0_9] : memref<128x128xbf16, #tpu.memory_space<vmem>>, vector<128x128xbf16>
      %cst_10 = arith.constant dense<0.000000e+00> : vector<128x128xf32>
      %10 = tpu.matmul %8, %9, %cst_10 {dimension_numbers = #tpu.dot_dimension_numbers<[1], [0], [0], [1], [0, 0, 1, 1], [], []>} : vector<128x128xbf16>, vector<128x128xbf16>, vector<128x128xf32> -> vector<128x128xf32>
      %cst_11 = arith.constant 0.000000e+00 : f32
      %11 = vector.broadcast %cst_11 : f32 to vector<128x128xf32>
      %12 = arith.maximumf %10, %11 : vector<128x128xf32>
      %13 = arith.mulf %12, %12 : vector<128x128xf32>
      %cst_12 = arith.constant dense<0.000000e+00> : vector<128xf32>
      %14 = vector.multi_reduction <add>, %13, %cst_12 [1] : vector<128x128xf32> to vector<128xf32>
      %15 = vector.shape_cast %14 : vector<128xf32> to vector<128x1xf32>
      %cst_13 = arith.constant 1.000000e-10 : f32
      %16 = vector.broadcast %cst_13 : f32 to vector<128x1xf32>
      %17 = arith.addf %15, %16 : vector<128x1xf32>
      %18 = math.rsqrt %17 : vector<128x1xf32>
      %19 = vector.broadcast %18 : vector<128x1xf32> to vector<128x128xf32>
      %20 = arith.mulf %12, %19 : vector<128x128xf32>
      %21 = arith.truncf %20 : vector<128x128xf32> to vector<128x128xbf16>
      %c0_14 = arith.constant 0 : index
      %c0_15 = arith.constant 0 : index
      %22 = vector.load %arg6[%c0_14, %c0_15] : memref<128x128xbf16, #tpu.memory_space<vmem>>, vector<128x128xbf16>
      tpu.vector_store %arg6[%c0_14, %c0_15], %21 {strides = array<i32>} : memref<128x128xbf16, #tpu.memory_space<vmem>>, vector<128x128xbf16>,
    } else {
    }
    %c0 = arith.constant 0 : index
    %c0_1 = arith.constant 0 : index
    %3 = vector.load %arg6[%c0, %c0_1] : memref<128x128xbf16, #tpu.memory_space<vmem>>, vector<128x128xbf16>
    %c0_2 = arith.constant 0 : index
    %c0_3 = arith.constant 0 : index
    %4 = vector.load %arg4[%c0_2, %c0_3] : memref<128x128xbf16, #tpu.memory_space<vmem>>, vector<128x128xbf16>
    %cst = arith.constant dense<0.000000e+00> : vector<128x128xf32>
    %5 = tpu.matmul %3, %4, %cst {dimension_numbers = #tpu.dot_dimension_numbers<[1], [0], [0], [1], [0, 0, 1, 1], [], []>} : vector<128x128xbf16>, vector<128x128xbf16>, vector<128x128xf32> -> vector<128x128xf32>
    %6 = arith.truncf %5 : vector<128x128xf32> to vector<128x128xbf16>
    %c0_4 = arith.constant 0 : index
    %c0_5 = arith.constant 0 : index
    %7 = vector.load %arg5[%c0_4, %c0_5] : memref<128x128xbf16, #tpu.memory_space<vmem>>, vector<128x128xbf16>
    tpu.vector_store %arg5[%c0_4, %c0_5], %6 {strides = array<i32>} : memref<128x128xbf16, #tpu.memory_space<vmem>>, vector<128x128xbf16>,
    return
  }
  func.func @transform_0(%arg0: i32, %arg1: i32) -> (i32, i32) {
    %c0_i32 = arith.constant 0 : i32
    %c0_i32_0 = arith.constant 0 : i32
    return %arg0, %c0_i32 : i32, i32
  }
  func.func @transform_1(%arg0: i32, %arg1: i32) -> (i32, i32) {
    %c0_i32 = arith.constant 0 : i32
    %c0_i32_0 = arith.constant 0 : i32
    %c0_i32_1 = arith.constant 0 : i32
    return %c0_i32, %c0_i32_0 : i32, i32
  }
  func.func @transform_2(%arg0: i32, %arg1: i32) -> (i32, i32) {
    %c0_i32 = arith.constant 0 : i32
    %c0_i32_0 = arith.constant 0 : i32
    return %c0_i32, %arg1 : i32, i32
  }
  func.func @transform_3(%arg0: i32, %arg1: i32) -> (i32, i32) {
    %c0_i32 = arith.constant 0 : i32
    return %arg0, %arg1 : i32, i32
  }
}

</mosaic_0001>

<bundles_post_ra>
// kernel: tpu_custom_call.1
= control target key start
LH: loop header
LB: loop body
LE: loop exit
PB: predicated region body
PF: predicated region fallthrough
CT: control target
= control target key end

     0   :  { %8 = vsyncpa [#allocation4], 0  ;;  %s1209_s0 = inlined_call_operand.hbm [shape: bf16[128,128], index: 0, kind: input, shape index: {}]   ;;  %s1210_s1 = inlined_call_operand.hbm [shape: bf16[128,128], index: 1, kind: input, shape index: {}]   ;;  %s1211_s2 = inlined_call_operand.hbm [shape: bf16[128,128], index: 2, kind: input, shape index: {}]   ;;  %s1212_s3 = inlined_call_operand.hbm [shape: bf16[128,128], index: 3, kind: output, shape index: {}]  }
   0x1   :  { %9 = vsyncpa [#allocation7], 0 }
   0x2   :  { %10 = vsyncpa [#allocation5], 0  ;;  %s1036_s12 = smov [#allocation6]   ;;  %s1037_s14 = smov [#allocation3]  }
   0x3   :  { %s28_s13 = sshll.u32 %s1036_s12, 4  ;;  %s16_s15 = sshll.u32 %s1037_s14, 4  ;;  %s29_s13 = int_to_ptr.vmem [resolvable:$true] %s28_s13  ;;  %s1062_s15 = int_to_ptr.vmem [resolvable:$true] %s16_s15 }
   0x4   :  { %s942_s18 = scalar_lea.hbm %s1210_s1, 1024 }
   0x5   :  { %p943_p0 = scmp.ne.s32.totalorder %s1210_s1, %s942_s18  ;;  %p946_p1 = scmp.lt.u32.totalorder %s942_s18, %s1210_s1 }
   0x7   :  { %p948_p2 = pnand %p946_p1, %p943_p0 }
   0x9   :  { %951 = shalt.err (!%p948_p2)
}
   0xa   :  { %s952_s23 = scalar_lea.vmem %s29_s13, 1024  ;;  %p957_p4 = scmp.lt.s32.totalorder %s29_s13, %s29_s13 }
   0xb   :  { %p953_p3 = scmp.ne.s32.totalorder %s29_s13, %s952_s23  ;;  %p958_p5 = scmp.lt.s32.totalorder %s952_s23, %s952_s23 }
   0xd   :  { %p959_p6 = por %p958_p5, %p957_p4 }
   0xf   :  { %p960_p7 = pnand %p959_p6, %p953_p3 }
  0x11   :  { %963 = shalt.err (!%p960_p7)
}
  0x12   :  { %s1038_s24 = smov 64   ;;  %s1039_s25 = smov 4  }
  0x13   :  { %34 = dma.hbm_to_vmem [thread:$0]  %s1210_s1, 1024, %s29_s13, [#allocation7], %s1038_s24, %s1038_s24, %s1039_s25  }
  0x14   :  { %s964_s30 = scalar_lea.hbm %s1209_s0, 1024 }
  0x15   :  { %p965_p8 = scmp.ne.s32.totalorder %s1209_s0, %s964_s30  ;;  %p968_p9 = scmp.lt.u32.totalorder %s964_s30, %s1209_s0 }
  0x17   :  { %p970_p10 = pnand %p968_p9, %p965_p8 }
  0x19   :  { %973 = shalt.err (!%p970_p10)
}
  0x1a   :  { %s974_s8 = scalar_lea.vmem %s1062_s15, 1024  ;;  %p979_p12 = scmp.lt.s32.totalorder %s1062_s15, %s1062_s15 }
  0x1b   :  { %p975_p11 = scmp.ne.s32.totalorder %s1062_s15, %s974_s8  ;;  %p980_p13 = scmp.lt.s32.totalorder %s974_s8, %s974_s8 }
  0x1d   :  { %p981_p0 = por %p980_p13, %p979_p12 }
  0x1f   :  { %p982_p1 = pnand %p981_p0, %p975_p11 }
  0x21   :  { %985 = shalt.err (!%p982_p1)
}
  0x22   :  { %22 = dma.hbm_to_vmem [thread:$0]  %s1209_s0, 1024, %s1062_s15, [#allocation4], %s1038_s24, %s1038_s24, %s1039_s25  }
  0x23   :  { %s1040_s10 = smov [#allocation8]   ;;  %s986_s14 = scalar_lea.hbm %s1211_s2, 1024 }
  0x24   :  { %s40_s11 = sshll.u32 %s1040_s10, 4  ;;  %p987_p2 = scmp.ne.s32.totalorder %s1211_s2, %s986_s14  ;;  %s41_s11 = int_to_ptr.vmem [resolvable:$true] %s40_s11 }
  0x25   :  { %p990_p3 = scmp.lt.u32.totalorder %s986_s14, %s1211_s2 }
  0x27   :  { %p992_p4 = pnand %p990_p3, %p987_p2 }
  0x29   :  { %995 = shalt.err (!%p992_p4)
}
  0x2a   :  { %s996_s20 = scalar_lea.vmem %s41_s11, 1024  ;;  %p1001_p6 = scmp.lt.s32.totalorder %s41_s11, %s41_s11 }
  0x2b   :  { %p997_p5 = scmp.ne.s32.totalorder %s41_s11, %s996_s20  ;;  %p1002_p7 = scmp.lt.s32.totalorder %s996_s20, %s996_s20 }
  0x2d   :  { %p1003_p8 = por %p1002_p7, %p1001_p6 }
  0x2f   :  { %p1004_p9 = pnand %p1003_p8, %p997_p5 }
  0x31   :  { %1007 = shalt.err (!%p1004_p9)
}
  0x32   :  { %46 = dma.hbm_to_vmem [thread:$0]  %s1211_s2, 1024, %s41_s11, [#allocation7], %s1038_s24, %s1038_s24, %s1039_s25  }
  0x33   :  { %1030 = dma.done.wait [#allocation4], 1024  }
  0x34   :  { %1031 = vsyncadd [#allocation4], 4294966272 }
  0x35   :  { %1032 = dma.done.wait [#allocation7], 2048  }
  0x36   :  { %1033 = vsyncadd [#allocation7], 4294965248  ;;  %v886_v0 = vld [vmem:[#allocation6] sm:$0xff]   ;;  %v887_v1 = vld [vmem:[#allocation6 + $0x8] sm:$0xff]   ;;  %s1041_s2 = smov [#allocation9]  }
  0x37   :  { %816 = vmatprep.subr.bf16.mxu0 %v886_v0  ;;  %v888_v2 = vld [vmem:[#allocation6 + $0x10] sm:$0xff]   ;;  %v889_v3 = vld [vmem:[#allocation6 + $0x18] sm:$0xff]   ;;  %v894_v4 = vld [vmem:[#allocation3] sm:$0xff]   ;;  %s668_s21 = sshll.u32 %s1041_s2, 4  ;;  %s669_s21 = int_to_ptr.vmem [resolvable:$true] %s668_s21 }
  0x38   :  { %817 = vmatpush3.bf16.msra.mxu0 %v886_v0  ;;  %832 = vmatprep.mubr.bf16.mxu0 %v894_v4  ;;  %v890_v5 = vld [vmem:[#allocation6 + $0x20] sm:$0xff]   ;;  %v891_v6 = vld [vmem:[#allocation6 + $0x28] sm:$0xff]   ;;  %v892_v7 = vld [vmem:[#allocation6 + $0x30] sm:$0xff]   ;;  %s1008_s22 = scalar_lea.vmem %s669_s21, 1024  ;;  %p1013_p11 = scmp.lt.s32.totalorder %s669_s21, %s669_s21 }
  0x39   :  { %818 = vmatprep.subr.bf16.mxu0 %v887_v1  ;;  %v893_v8 = vld [vmem:[#allocation6 + $0x38] sm:$0xff]   ;;  %v895_v9 = vld [vmem:[#allocation3 + $0x8] sm:$0xff]   ;;  %v896_v10 = vld [vmem:[#allocation3 + $0x10] sm:$0xff]   ;;  %p1009_p10 = scmp.ne.s32.totalorder %s669_s21, %s1008_s22  ;;  %p1014_p12 = scmp.lt.s32.totalorder %s1008_s22, %s1008_s22 }
  0x3a   :  { %v897_v11 = vld [vmem:[#allocation3 + $0x18] sm:$0xff]   ;;  %v898_v12 = vld [vmem:[#allocation3 + $0x20] sm:$0xff]   ;;  %v899_v13 = vld [vmem:[#allocation3 + $0x28] sm:$0xff]  }
  0x3b   :  { %v900_v14 = vld [vmem:[#allocation3 + $0x30] sm:$0xff]   ;;  %v901_v15 = vld [vmem:[#allocation3 + $0x38] sm:$0xff]   ;;  %v902_v16 = vld [vmem:[#allocation8] sm:$0xff]   ;;  %p1015_p13 = por %p1014_p12, %p1013_p11 }
  0x3c   :  { %819 = vmatpush3.bf16.msra.mxu0 %v887_v1  ;;  %v903_v17 = vld [vmem:[#allocation8 + $0x8] sm:$0xff]   ;;  %848 = vmatprep.subr.bf16.mxu1 %v902_v16  ;;  %v904_v18 = vld [vmem:[#allocation8 + $0x10] sm:$0xff]   ;;  %v905_v51 = vld [vmem:[#allocation8 + $0x18] sm:$0xff]  }
  0x3d   :  { %820 = vmatprep.subr.bf16.mxu0 %v888_v2  ;;  %849 = vmatpush3.bf16.msra.mxu1 %v902_v16  ;;  %v906_v56 = vld [vmem:[#allocation8 + $0x20] sm:$0xff]   ;;  %v907_v1 = vld [vmem:[#allocation8 + $0x28] sm:$0xff]   ;;  %p1016_p0 = pnand %p1015_p13, %p1009_p10 }
  0x3e   :  { %850 = vmatprep.subr.bf16.mxu1 %v903_v17 }
  0x40   :  { %821 = vmatpush3.bf16.msra.mxu0 %v888_v2 }
  0x41   :  { %822 = vmatprep.subr.bf16.mxu0 %v889_v3  ;;  %851 = vmatpush3.bf16.msra.mxu1 %v903_v17 }
  0x42   :  { %852 = vmatprep.subr.bf16.mxu1 %v904_v18 }
  0x44   :  { %823 = vmatpush3.bf16.msra.mxu0 %v889_v3 }
  0x45   :  { %824 = vmatprep.subr.bf16.mxu0 %v890_v5  ;;  %853 = vmatpush3.bf16.msra.mxu1 %v904_v18 }
  0x46   :  { %854 = vmatprep.subr.bf16.mxu1 %v905_v51 }
  0x48   :  { %825 = vmatpush3.bf16.msra.mxu0 %v890_v5  ;;  %v908_v5 = vld [vmem:[#allocation8 + $0x30] sm:$0xff]  }
  0x49   :  { %826 = vmatprep.subr.bf16.mxu0 %v891_v6  ;;  %855 = vmatpush3.bf16.msra.mxu1 %v905_v51 }
  0x4a   :  { %856 = vmatprep.subr.bf16.mxu1 %v906_v56 }
  0x4c   :  { %827 = vmatpush3.bf16.msra.mxu0 %v891_v6 }
  0x4d   :  { %828 = vmatprep.subr.bf16.mxu0 %v892_v7  ;;  %857 = vmatpush3.bf16.msra.mxu1 %v906_v56 }
  0x4e   :  { %858 = vmatprep.subr.bf16.mxu1 %v907_v1 }
  0x50   :  { %829 = vmatpush3.bf16.msra.mxu0 %v892_v7  ;;  %v909_v7 = vld [vmem:[#allocation8 + $0x38] sm:$0xff]  }
  0x51   :  { %830 = vmatprep.subr.bf16.mxu0 %v893_v8  ;;  %859 = vmatpush3.bf16.msra.mxu1 %v907_v1 }
  0x52   :  { %860 = vmatprep.subr.bf16.mxu1 %v908_v5 }
  0x54   :  { %831 = vmatpush3.bf16.msra.mxu0 %v893_v8 }
  0x55   :  { %861 = vmatpush3.bf16.msra.mxu1 %v908_v5 }
  0x56   :  { %862 = vmatprep.subr.bf16.mxu1 %v909_v7 }
  0x57   :  { %833 = vmatmul.mubr.bf16.vlgmr.msra.gmra.mrb[0].mxu0 %v895_v9 }
  0x58   :  { %836 = vmatprep.mubr.bf16.mxu0 %v896_v10 }
  0x59   :  { %863 = vmatpush3.bf16.msra.mxu1 %v909_v7 }
  0x5f   :  { %837 = vmatmul.mubr.bf16.gmra.mrb[4].mxu0 %v897_v11 }
  0x60   :  { %840 = vmatprep.mubr.bf16.mxu0 %v898_v12 }
  0x67   :  { %841 = vmatmul.mubr.bf16.gmra.mrb[8].mxu0 %v899_v13 }
  0x68   :  { %844 = vmatprep.mubr.bf16.mxu0 %v900_v14 }
  0x6f   :  { %845 = vmatmul.mubr.bf16.gmra.mrb[12].mxu0 %v901_v15 }
 0x12a   :  { %v834_v19 = vpop.f32.mrb[0].mxu0 }
 0x12b   :  { %v1114_v20 = vmax.f32 %v834_v19, 0.0  ;;  %v223_v21 = vpop.f32.mrb[1].mxu0 }
 0x12c   :  { %v1116_v22 = vmax.f32 %v223_v21, 0.0  ;;  %v835_v23 = vpop.f32.mrb[2].mxu0 }
 0x12d   :  { %v1118_v24 = vmax.f32 %v835_v23, 0.0  ;;  %v226_v25 = vpop.f32.mrb[3].mxu0  ;;  %v304_v26 = vmul.f32 %v1114_v20, %v1114_v20 }
 0x12e   :  { %v1122_v27 = vmax.f32 %v226_v25, 0.0  ;;  %v302_v28 = vmul.f32 %v1116_v22, %v1116_v22 }
 0x12f   :  { %322 = vadd.xlane.f32.xlu1 %v304_v26  ;;  %v305_v29 = vmul.f32 %v1118_v24, %v1118_v24 }
 0x130   :  { %318 = vadd.xlane.f32.xlu0 %v302_v28  ;;  %v303_v31 = vmul.f32 %v1122_v27, %v1122_v27 }
 0x132   :  { %v838_v30 = vpop.f32.mrb[4].mxu0 }
 0x133   :  { %324 = vadd.xlane.f32.xlu1 %v305_v29  ;;  %v239_v32 = vpop.f32.mrb[5].mxu0  ;;  %v1132_v36 = vmax.f32 %v838_v30, 0.0 }
 0x134   :  { %v1130_v33 = vmax.f32 %v239_v32, 0.0  ;;  %320 = vadd.xlane.f32.xlu0 %v303_v31  ;;  %v839_v34 = vpop.f32.mrb[6].mxu0 }
 0x135   :  { %v242_v35 = vpop.f32.mrb[7].mxu0  ;;  %v1138_v39 = vmax.f32 %v839_v34, 0.0  ;;  %v308_v42 = vmul.f32 %v1132_v36, %v1132_v36 }
 0x136   :  { %v1134_v37 = vmax.f32 %v242_v35, 0.0  ;;  %v306_v38 = vmul.f32 %v1130_v33, %v1130_v33 }
 0x137   :  { %v309_v46 = vmul.f32 %v1138_v39, %v1138_v39 }
 0x138   :  { %326 = vadd.xlane.f32.xlu0 %v306_v38  ;;  %v307_v40 = vmul.f32 %v1134_v37, %v1134_v37 }
 0x13a   :  { %328 = vadd.xlane.f32.xlu1 %v307_v40  ;;  %v842_v41 = vpop.f32.mrb[8].mxu0 }
 0x13b   :  { %v255_v43 = vpop.f32.mrb[9].mxu0  ;;  %v1148_v48 = vmax.f32 %v842_v41, 0.0 }
 0x13c   :  { %v1144_v44 = vmax.f32 %v255_v43, 0.0  ;;  %330 = vadd.xlane.f32.xlu0 %v308_v42  ;;  %v843_v45 = vpop.f32.mrb[10].mxu0 }
 0x13d   :  { %v258_v47 = vpop.f32.mrb[11].mxu0  ;;  %v1154_v52 = vmax.f32 %v843_v45, 0.0  ;;  %v312_v55 = vmul.f32 %v1148_v48, %v1148_v48 }
 0x13e   :  { %v1150_v49 = vmax.f32 %v258_v47, 0.0  ;;  %332 = vadd.xlane.f32.xlu1 %v309_v46  ;;  %v310_v50 = vmul.f32 %v1144_v44, %v1144_v44 }
 0x13f   :  { %v313_v60 = vmul.f32 %v1154_v52, %v1154_v52 }
 0x140   :  { %334 = vadd.xlane.f32.xlu0 %v310_v50  ;;  %v311_v53 = vmul.f32 %v1150_v49, %v1150_v49 }
 0x142   :  { %336 = vadd.xlane.f32.xlu1 %v311_v53  ;;  %v846_v54 = vpop.f32.mrb[12].mxu0 }
 0x143   :  { %v271_v57 = vpop.f32.mrb[13].mxu0  ;;  %v1164_v62 = vmax.f32 %v846_v54, 0.0 }
 0x144   :  { %v1160_v58 = vmax.f32 %v271_v57, 0.0  ;;  %338 = vadd.xlane.f32.xlu0 %v312_v55  ;;  %v847_v59 = vpop.f32.mrb[14].mxu0 }
 0x145   :  { %v274_v61 = vpop.f32.mrb[15].mxu0  ;;  %v1170_v2 = vmax.f32 %v847_v59, 0.0  ;;  %v316_v4 = vmul.f32 %v1164_v62, %v1164_v62 }
 0x146   :  { %v1166_v63 = vmax.f32 %v274_v61, 0.0  ;;  %340 = vadd.xlane.f32.xlu1 %v313_v60  ;;  %v314_v0 = vmul.f32 %v1160_v58, %v1160_v58 }
 0x147   :  { %v317_v6 = vmul.f32 %v1170_v2, %v1170_v2 }
 0x148   :  { %342 = vadd.xlane.f32.xlu0 %v314_v0  ;;  %v315_v3 = vmul.f32 %v1166_v63, %v1166_v63 }
 0x14a   :  { %344 = vadd.xlane.f32.xlu1 %v315_v3 }
 0x14c   :  { %346 = vadd.xlane.f32.xlu0 %v316_v4 }
 0x14e   :  { %348 = vadd.xlane.f32.xlu1 %v317_v6 }
 0x1bc   :  { %v323_v8 = vpop.xlane.xlu1 %322 }
 0x1bd   :  { %v352_v9 = vadd.f32 1e-10, %v323_v8  ;;  %v319_v10 = vpop.xlane.xlu0 %318 }
 0x1be   :  { %v350_v11 = vadd.f32 1e-10, %v319_v10 }
 0x1bf   :  { %910 = vrsqrt.f32 %v352_v9 }
 0x1c0   :  { %v325_v12 = vpop.xlane.xlu1 %324  ;;  %912 = vrsqrt.f32 %v350_v11 }
 0x1c1   :  { %v353_v13 = vadd.f32 1e-10, %v325_v12  ;;  %v321_v14 = vpop.xlane.xlu0 %320 }
 0x1c2   :  { %v351_v15 = vadd.f32 1e-10, %v321_v14 }
 0x1c3   :  { %914 = vrsqrt.f32 %v353_v13 }
 0x1c4   :  { %916 = vrsqrt.f32 %v351_v15 }
 0x1c5   :  { %v327_v16 = vpop.xlane.xlu0 %326 }
 0x1c6   :  { %v354_v17 = vadd.f32 1e-10, %v327_v16 }
 0x1c7   :  { %v329_v18 = vpop.xlane.xlu1 %328 }
 0x1c8   :  { %918 = vrsqrt.f32 %v354_v17  ;;  %v355_v19 = vadd.f32 1e-10, %v329_v18 }
 0x1c9   :  { %v331_v21 = vpop.xlane.xlu0 %330  ;;  %v911_v25 = vpop.eup %910 }
 0x1ca   :  { %920 = vrsqrt.f32 %v355_v19  ;;  %v356_v23 = vadd.f32 1e-10, %v331_v21  ;;  %v913_v28 = vpop.eup %912  ;;  %v384_v43 = vmul.f32 %v911_v25, %v1114_v20 }
 0x1cb   :  { %v333_v26 = vpop.xlane.xlu1 %332  ;;  %v382_v40 = vmul.f32 %v913_v28, %v1116_v22 }
 0x1cc   :  { %922 = vrsqrt.f32 %v356_v23  ;;  %v357_v29 = vadd.f32 1e-10, %v333_v26 }
 0x1cd   :  { %v915_v30 = vpop.eup %914  ;;  %v335_v31 = vpop.xlane.xlu0 %334 }
 0x1ce   :  { %v917_v32 = vpop.eup %916  ;;  %924 = vrsqrt.f32 %v357_v29  ;;  %v358_v34 = vadd.f32 1e-10, %v335_v31  ;;  %v385_v35 = vmul.f32 %v915_v30, %v1118_v24 }
 0x1cf   :  { %v337_v38 = vpop.xlane.xlu1 %336  ;;  %v383_v41 = vmul.f32 %v917_v32, %v1122_v27 }
 0x1d0   :  { %926 = vrsqrt.f32 %v358_v34  ;;  %v359_v42 = vadd.f32 1e-10, %v337_v38  ;;  %v399_v51 = vpack.c.bf16 %v385_v35, %v384_v43 }
 0x1d1   :  { %v339_v45 = vpop.xlane.xlu0 %338  ;;  %v398_v46 = vpack.c.bf16 %v383_v41, %v382_v40 }
 0x1d2   :  { %v919_v47 = vpop.eup %918  ;;  %928 = vrsqrt.f32 %v359_v42  ;;  %v360_v50 = vadd.f32 1e-10, %v339_v45 }
 0x1d3   :  { %864 = vmatprep.mubr.bf16.mxu1 %v398_v46  ;;  %v341_v53 = vpop.xlane.xlu1 %340  ;;  %v386_v22 = vmul.f32 %v919_v47, %v1130_v33 }
 0x1d4   :  { %v921_v54 = vpop.eup %920  ;;  %930 = vrsqrt.f32 %v360_v50  ;;  %v361_v24 = vadd.f32 1e-10, %v341_v53  ;;  %865 = vmatmul.mubr.bf16.vlgmr.msra.gmra.mrb[0].mxu1 %v399_v51 }
 0x1d5   :  { %v343_v55 = vpop.xlane.xlu0 %342  ;;  %v387_v27 = vmul.f32 %v921_v54, %v1134_v37 }
 0x1d6   :  { %v923_v56 = vpop.eup %922  ;;  %932 = vrsqrt.f32 %v361_v24  ;;  %v362_v20 = vadd.f32 1e-10, %v343_v55 }
 0x1d7   :  { %v345_v57 = vpop.xlane.xlu1 %344  ;;  %v400_v59 = vpack.c.bf16 %v387_v27, %v386_v22  ;;  %v388_v1 = vmul.f32 %v923_v56, %v1132_v36 }
 0x1d8   :  { %v925_v60 = vpop.eup %924  ;;  %934 = vrsqrt.f32 %v362_v20  ;;  %v363_v61 = vadd.f32 1e-10, %v345_v57 }
 0x1d9   :  { %868 = vmatprep.mubr.bf16.mxu1 %v400_v59  ;;  %v347_v0 = vpop.xlane.xlu0 %346  ;;  %v389_v3 = vmul.f32 %v925_v60, %v1138_v39 }
 0x1da   :  { %v927_v4 = vpop.eup %926  ;;  %936 = vrsqrt.f32 %v363_v61  ;;  %v364_v5 = vadd.f32 1e-10, %v347_v0 }
 0x1db   :  { %v349_v33 = vpop.xlane.xlu1 %348  ;;  %v401_v6 = vpack.c.bf16 %v389_v3, %v388_v1  ;;  %v390_v8 = vmul.f32 %v927_v4, %v1144_v44 }
 0x1dc   :  { %v929_v37 = vpop.eup %928  ;;  %938 = vrsqrt.f32 %v364_v5  ;;  %v365_v7 = vadd.f32 1e-10, %v349_v33 }
 0x1dd   :  { %869 = vmatmul.mubr.bf16.gmra.mrb[4].mxu1 %v401_v6  ;;  %v391_v9 = vmul.f32 %v929_v37, %v1150_v49 }
 0x1de   :  { %v931_v10 = vpop.eup %930  ;;  %940 = vrsqrt.f32 %v365_v7 }
 0x1df   :  { %v402_v11 = vpack.c.bf16 %v391_v9, %v390_v8  ;;  %v392_v36 = vmul.f32 %v931_v10, %v1148_v48 }
 0x1e0   :  { %v933_v12 = vpop.eup %932 }
 0x1e1   :  { %872 = vmatprep.mubr.bf16.mxu1 %v402_v11  ;;  %v393_v39 = vmul.f32 %v933_v12, %v1154_v52 }
 0x1e2   :  { %v935_v13 = vpop.eup %934 }
 0x1e3   :  { %v403_v14 = vpack.c.bf16 %v393_v39, %v392_v36  ;;  %v394_v16 = vmul.f32 %v935_v13, %v1160_v58 }
 0x1e4   :  { %v937_v15 = vpop.eup %936 }
 0x1e5   :  { %873 = vmatmul.mubr.bf16.gmra.mrb[8].mxu1 %v403_v14  ;;  %v395_v17 = vmul.f32 %v937_v15, %v1166_v63 }
 0x1e6   :  { %v939_v44 = vpop.eup %938 }
 0x1e7   :  { %v404_v18 = vpack.c.bf16 %v395_v17, %v394_v16  ;;  %v396_v19 = vmul.f32 %v939_v44, %v1164_v62 }
 0x1e8   :  { %v941_v49 = vpop.eup %940 }
 0x1e9   :  { %876 = vmatprep.mubr.bf16.mxu1 %v404_v18  ;;  %v397_v21 = vmul.f32 %v941_v49, %v1170_v2 }
 0x1eb   :  { %v405_v23 = vpack.c.bf16 %v397_v21, %v396_v19 }
 0x1ed   :  { %877 = vmatmul.mubr.bf16.gmra.mrb[12].mxu1 %v405_v23 }
 0x2a7   :  { %v866_v48 = vpop.f32.mrb[0].mxu1 }
 0x2a8   :  { %v520_v52 = vpop.f32.mrb[1].mxu1 }
 0x2a9   :  { %v867_v25 = vpop.f32.mrb[2].mxu1 }
 0x2aa   :  { %v745_v26 = vpack.c.bf16 %v867_v25, %v866_v48  ;;  %v523_v28 = vpop.f32.mrb[3].mxu1 }
 0x2ab   :  { %v740_v29 = vpack.c.bf16 %v523_v28, %v520_v52 }
 0x2ac   :  { %777 = vst [vmem:[#allocation9 + $0x8] sm:$0xff] %v745_v26  }
 0x2ad   :  { %741 = vst [vmem:[#allocation9] sm:$0xff] %v740_v29  }
 0x2b0   :  { %v870_v58 = vpop.f32.mrb[4].mxu1 }
 0x2b1   :  { %v536_v63 = vpop.f32.mrb[5].mxu1 }
 0x2b2   :  { %v871_v30 = vpop.f32.mrb[6].mxu1 }
 0x2b3   :  { %v755_v31 = vpack.c.bf16 %v871_v30, %v870_v58  ;;  %v539_v32 = vpop.f32.mrb[7].mxu1 }
 0x2b4   :  { %v750_v34 = vpack.c.bf16 %v539_v32, %v536_v63 }
 0x2b5   :  { %779 = vst [vmem:[#allocation9 + $0x18] sm:$0xff] %v755_v31  }
 0x2b6   :  { %778 = vst [vmem:[#allocation9 + $0x10] sm:$0xff] %v750_v34  }
 0x2b8   :  { %v874_v62 = vpop.f32.mrb[8].mxu1 }
 0x2b9   :  { %v552_v2 = vpop.f32.mrb[9].mxu1 }
 0x2ba   :  { %v875_v35 = vpop.f32.mrb[10].mxu1 }
 0x2bb   :  { %v765_v38 = vpack.c.bf16 %v875_v35, %v874_v62  ;;  %v555_v40 = vpop.f32.mrb[11].mxu1 }
 0x2bc   :  { %v760_v41 = vpack.c.bf16 %v555_v40, %v552_v2 }
 0x2bd   :  { %781 = vst [vmem:[#allocation9 + $0x28] sm:$0xff] %v765_v38  }
 0x2be   :  { %780 = vst [vmem:[#allocation9 + $0x20] sm:$0xff] %v760_v41  }
 0x2c0   :  { %v878_v42 = vpop.f32.mrb[12].mxu1 }
 0x2c1   :  { %v568_v43 = vpop.f32.mrb[13].mxu1 }
 0x2c2   :  { %v879_v45 = vpop.f32.mrb[14].mxu1 }
 0x2c3   :  { %v775_v46 = vpack.c.bf16 %v879_v45, %v878_v42  ;;  %v571_v47 = vpop.f32.mrb[15].mxu1 }
 0x2c4   :  { %v770_v50 = vpack.c.bf16 %v571_v47, %v568_v43 }
 0x2c5   :  { %783 = vst [vmem:[#allocation9 + $0x38] sm:$0xff] %v775_v46  }
 0x2c6   :  { %782 = vst [vmem:[#allocation9 + $0x30] sm:$0xff] %v770_v50  }
 0x2c7   :  { %1019 = shalt.err (!%p1016_p0)
}
 0x2c8   :  { %s1020_s27 = scalar_lea.hbm %s1212_s3, 1024 }
 0x2c9   :  { %p1021_p1 = scmp.ne.s32.totalorder %s1212_s3, %s1020_s27  ;;  %p1024_p2 = scmp.lt.u32.totalorder %s1020_s27, %s1212_s3 }
 0x2cb   :  { %p1026_p3 = pnand %p1024_p2, %p1021_p1 }
 0x2cd   :  { %1029 = shalt.err (!%p1026_p3)
}
 0x2ce   :  { %674 = dma.vmem_to_hbm [thread:$0]  %s669_s21, 1024, %s1212_s3, [#allocation5], %s1038_s24, %s1038_s24, %s1039_s25  }
 0x2cf   :  { %1034 = dma.done.wait [#allocation5], 1024  }
 0x2d0   :  { %1035 = vsyncadd [#allocation5], 4294966272 }
 0x2d1   :  { %678 = vsyncpa [#allocation4], 1 }
 0x2d2   :  { %679 = vsyncpa [#allocation7], 1 }
 0x2d3   :  { %680 = vsyncpa [#allocation5], 1 }

</bundles_post_ra>
